<compile_context>
chip_gen: v7x
topology: tpu7x:2x2x1
jax: 0.10.0
libtpu: 0.0.40
codegen_flags: <defaults>
</compile_context>

<pallas_src>
import functools

import jax
import jax.numpy as jnp
import numpy as np
from jax import lax
from jax.experimental import pallas as pl
from jax.experimental.pallas import tpu as pltpu

# ---------------- problem constants (from the PyTorch module) ----------------
IN_CHANNELS = 32
OUT_CHANNELS = 16
KERNEL_SIZE = 4
STRIDE = 2
PADDING = 1
OUTPUT_PADDING = 1


def _round_up(x, m):
    return ((x + m - 1) // m) * m


# ------------------------------- Pallas kernel -------------------------------
def _convt_phase_kernel(x_ref, w_ref, b_ref, o_ref, rhs_ref, *, cin, wp, chunk, n_shifts):
    # x_ref  : (Cin, Lx)        flattened zero-padded input image (row stride = wp)
    # w_ref  : (4*Cout, 9*Cin)  phase-stacked / shift-stacked weights (zeros where unused)
    # b_ref  : (4*Cout, 1)      conv_bias - subtract_bias, tiled over the 4 phases
    # o_ref  : (4*Cout, L)      flat per-phase output, L = chunk (lane-dense, mult of 128)
    # rhs_ref: (9*Cin, L)       VMEM scratch: stacked shifted views of the input
    for s in range(n_shifts * n_shifts):                      # 9 static shifted copies
        off = (s // n_shifts) * wp + (s % n_shifts)           # rh*wp + rw, static
        rhs_ref[s * cin:(s + 1) * cin, :] = x_ref[:, off:off + chunk]
    acc = jnp.dot(w_ref[...], rhs_ref[...], preferred_element_type=jnp.float32)
    o_ref[...] = jnp.tanh(acc + b_ref[...]).astype(o_ref.dtype)


# ------------------------------ JAX-side glue ---------------------------------
@functools.partial(jax.jit, static_argnames=("stride", "padding", "output_padding"))
def model_forward(x, conv_w, conv_b, sub_b, *, stride, padding, output_padding):
    """x: (B, Cin, H, W) f32. Returns (B, Cout, Hout, Wout) NCHW f32."""
    bsz, cin, h, w = x.shape
    cin_w, cout, k, k2 = conv_w.shape
    assert cin == cin_w and k == k2
    # The phase decomposition below is specialized to this module's configuration.
    assert stride == 2 and k == 4 and padding == 1 and output_padding == 1

    h_out = stride * (h - 1) - 2 * padding + k + output_padding      # 33
    w_out = stride * (w - 1) - 2 * padding + k + output_padding      # 33
    qh_n = -(-h_out // stride)                                       # 17 phase rows
    qw_n = -(-w_out // stride)                                       # 17 phase cols
    n_shifts = 3                                                     # rh, rw in {0,1,2}
    n_ph = stride * stride                                           # 4 phases

    # ---- flat layout geometry ("flatten + overcompute": garbage lanes discarded) ----
    wp = qw_n + n_shifts                                             # 20 (>= qw_n + max rw)
    l_out = _round_up((qh_n - 1) * wp + qw_n, 128)                   # 384 flat lanes computed
    off_max = (n_shifts - 1) * wp + (n_shifts - 1)                   # 42 max shifted read
    hp = max(-(-(l_out + off_max) // wp), 1 + h + 1)                 # 22 padded rows
    pad_b, pad_r = hp - 1 - h, wp - 1 - w                            # 5, 3
    assert pad_b >= 1 and pad_r >= 1
    lx = hp * wp                                                     # 440

    # ---- input: ONE pad + free flatten (no dilation, no scatter) ----
    xf = jnp.pad(x.astype(jnp.float32),
                 ((0, 0), (0, 0), (1, pad_b), (1, pad_r))).reshape(bsz, cin, lx)

    # ---- weights: build the (4*Cout, 9*Cin) phase/shift matrix with a constant 0/1 map ----
    # For output phase (ph, pw) and tap (j, l):
    #   shift slot  (rh, rw) = (1 + ph - j, 1 + pw - l)
    #   weight tap  (kh, kw) = (2*j + 1 - ph, 2*l + 1 - pw)
    m_np = np.zeros((n_ph, n_shifts * n_shifts, k, k), np.float32)
    for ph in range(stride):
        for pw in range(stride):
            p = ph * stride + pw
            for j in range(k // stride):
                for l in range(k // stride):
                    rh, rw = 1 + ph - j, 1 + pw - l
                    kh, kw = 2 * j + 1 - ph, 2 * l + 1 - pw
                    m_np[p, rh * n_shifts + rw, kh, kw] = 1.0
    w_mat = jnp.einsum("iohw,pshw->posi", conv_w.astype(jnp.float32), jnp.asarray(m_np))
    w_mat = w_mat.reshape(n_ph * cout, n_shifts * n_shifts * cin)            # (64, 288)
    b_mat = jnp.tile((conv_b.reshape(cout, 1) - sub_b.reshape(cout, 1)),
                     (n_ph, 1)).astype(jnp.float32)                          # (64, 1)

    kernel = functools.partial(_convt_phase_kernel, cin=cin, wp=wp,
                               chunk=l_out, n_shifts=n_shifts)

    out_flat = pl.pallas_call(
        kernel,
        out_shape=jax.ShapeDtypeStruct((bsz, n_ph * cout, l_out), jnp.float32),
        grid_spec=pltpu.PrefetchScalarGridSpec(
            num_scalar_prefetch=0,
            grid=(bsz,),
            in_specs=[
                pl.BlockSpec((None, cin, lx), lambda i: (i, 0, 0)),
                pl.BlockSpec((n_ph * cout, n_shifts * n_shifts * cin), lambda i: (0, 0)),
                pl.BlockSpec((n_ph * cout, 1), lambda i: (0, 0)),
            ],
            out_specs=pl.BlockSpec((None, n_ph * cout, l_out), lambda i: (i, 0, 0)),
            scratch_shapes=[pltpu.VMEM((n_shifts * n_shifts * cin, l_out), jnp.float32)],
        ),
        compiler_params=pltpu.CompilerParams(dimension_semantics=("parallel",)),
    )(xf, w_mat, b_mat)

    # ---- epilogue: de-interleave the 4 phases (single slice+transpose fusion) ----
    y = out_flat[:, :, : qh_n * wp].reshape(bsz, stride, stride, cout, qh_n, wp)[..., :qw_n]
    y = y.transpose(0, 3, 4, 1, 5, 2).reshape(bsz, cout, stride * qh_n, stride * qw_n)
    return y[:, :, :h_out, :w_out]


# ------------------------------ reference check -------------------------------
def _reference(x, conv_w, conv_b, sub_b, *, stride, padding, output_padding):
    k = conv_w.shape[-1]
    # conv_transpose == lhs-dilated regular conv with flipped, transposed kernel
    w_conv = jnp.flip(conv_w, axis=(-1, -2)).transpose(1, 0, 2, 3)  # (Cout, Cin, K, K)
    y = lax.conv_general_dilated(
        x, w_conv,
        window_strides=(1, 1),
        padding=[(k - 1 - padding, k - 1 - padding + output_padding)] * 2,
        lhs_dilation=(stride, stride),
        dimension_numbers=("NCHW", "OIHW", "NCHW"),
        precision=lax.Precision.HIGHEST,
    )
    y = y + conv_b.reshape(1, -1, 1, 1)
    y = y - sub_b.reshape(1, -1, 1, 1)
    return jnp.tanh(y)


if __name__ == "__main__":
    key = jax.random.PRNGKey(0)
    k_x, k_w, k_b1, k_b2 = jax.random.split(key, 4)

    batch, height, width = 2, 16, 16
    x = jax.random.normal(k_x, (batch, IN_CHANNELS, height, width), jnp.float32)

    # deterministic parameter init (shapes from nn.ConvTranspose2d(32, 16, 4))
    fan_in = IN_CHANNELS * KERNEL_SIZE * KERNEL_SIZE
    bound = 1.0 / np.sqrt(fan_in)
    conv_w = jax.random.uniform(
        k_w, (IN_CHANNELS, OUT_CHANNELS, KERNEL_SIZE, KERNEL_SIZE),
        jnp.float32, -bound, bound)
    conv_b = jax.random.uniform(k_b1, (OUT_CHANNELS,), jnp.float32, -bound, bound)
    sub_b = jax.random.normal(k_b2, (OUT_CHANNELS, 1, 1), jnp.float32) * 0.02

    out = model_forward(x, conv_w, conv_b, sub_b,
                        stride=STRIDE, padding=PADDING, output_padding=OUTPUT_PADDING)
    out = jax.block_until_ready(out)

    expected_h = STRIDE * (height - 1) - 2 * PADDING + KERNEL_SIZE + OUTPUT_PADDING
    assert out.shape == (batch, OUT_CHANNELS, expected_h, expected_h), out.shape

    ref = jax.block_until_ready(
        _reference(x, conv_w, conv_b, sub_b,
                   stride=STRIDE, padding=PADDING, output_padding=OUTPUT_PADDING))
    np.testing.assert_allclose(np.asarray(out), np.asarray(ref), atol=2e-4, rtol=2e-4)

    print("KERNEL_OK")
</pallas_src>

<mosaic_0001>
module attributes {stable_mosaic.version = 11 : i64} {
  func.func @_convt_phase_kernel(%arg0: i32, %arg1: memref<1x32x440xf32, #tpu.memory_space<vmem>>, %arg2: memref<64x288xf32, #tpu.memory_space<vmem>>, %arg3: memref<64x1xf32, #tpu.memory_space<vmem>>, %arg4: memref<1x64x384xf32, #tpu.memory_space<vmem>>, %arg5: memref<288x384xf32, #tpu.memory_space<vmem>>) attributes {dimension_semantics = [#tpu.dimension_semantics<parallel>], iteration_bounds = array<i64: 2>, scalar_prefetch = 0 : i64, scratch_operands = 1 : i64, tpu.core_type = #tpu.core_type<tc>, window_params = [{transform_indices = @transform_0, window_bounds = array<i64: 1, 32, 440>}, {pipeline_mode = #tpu.pipeline_mode<synchronous>, transform_indices = @transform_1, window_bounds = array<i64: 64, 288>}, {pipeline_mode = #tpu.pipeline_mode<synchronous>, transform_indices = @transform_2, window_bounds = array<i64: 64, 1>}, {transform_indices = @transform_3, window_bounds = array<i64: 1, 64, 384>}]} {
    %c0 = arith.constant 0 : index
    %c0_0 = arith.constant 0 : index
    %c0_1 = arith.constant 0 : index
    %0 = vector.load %arg1[%c0, %c0_0, %c0_1] : memref<1x32x440xf32, #tpu.memory_space<vmem>>, vector<1x32x384xf32>
    %1 = vector.shape_cast %0 : vector<1x32x384xf32> to vector<32x384xf32>
    %c0_2 = arith.constant 0 : index
    %c0_3 = arith.constant 0 : index
    %2 = vector.load %arg5[%c0_2, %c0_3] : memref<288x384xf32, #tpu.memory_space<vmem>>, vector<32x384xf32>
    tpu.vector_store %arg5[%c0_2, %c0_3], %1 {strides = array<i32>} : memref<288x384xf32, #tpu.memory_space<vmem>>, vector<32x384xf32>,
    %c0_4 = arith.constant 0 : index
    %c0_5 = arith.constant 0 : index
    %c1 = arith.constant 1 : index
    %3 = vector.load %arg1[%c0_4, %c0_5, %c1] : memref<1x32x440xf32, #tpu.memory_space<vmem>>, vector<1x32x384xf32>
    %4 = vector.shape_cast %3 : vector<1x32x384xf32> to vector<32x384xf32>
    %c32 = arith.constant 32 : index
    %c0_6 = arith.constant 0 : index
    %5 = vector.load %arg5[%c32, %c0_6] : memref<288x384xf32, #tpu.memory_space<vmem>>, vector<32x384xf32>
    tpu.vector_store %arg5[%c32, %c0_6], %4 {strides = array<i32>} : memref<288x384xf32, #tpu.memory_space<vmem>>, vector<32x384xf32>,
    %c0_7 = arith.constant 0 : index
    %c0_8 = arith.constant 0 : index
    %c2 = arith.constant 2 : index
    %6 = vector.load %arg1[%c0_7, %c0_8, %c2] : memref<1x32x440xf32, #tpu.memory_space<vmem>>, vector<1x32x384xf32>
    %7 = vector.shape_cast %6 : vector<1x32x384xf32> to vector<32x384xf32>
    %c64 = arith.constant 64 : index
    %c0_9 = arith.constant 0 : index
    %8 = vector.load %arg5[%c64, %c0_9] : memref<288x384xf32, #tpu.memory_space<vmem>>, vector<32x384xf32>
    tpu.vector_store %arg5[%c64, %c0_9], %7 {strides = array<i32>} : memref<288x384xf32, #tpu.memory_space<vmem>>, vector<32x384xf32>,
    %c0_10 = arith.constant 0 : index
    %c0_11 = arith.constant 0 : index
    %c20 = arith.constant 20 : index
    %9 = vector.load %arg1[%c0_10, %c0_11, %c20] : memref<1x32x440xf32, #tpu.memory_space<vmem>>, vector<1x32x384xf32>
    %10 = vector.shape_cast %9 : vector<1x32x384xf32> to vector<32x384xf32>
    %c96 = arith.constant 96 : index
    %c0_12 = arith.constant 0 : index
    %11 = vector.load %arg5[%c96, %c0_12] : memref<288x384xf32, #tpu.memory_space<vmem>>, vector<32x384xf32>
    tpu.vector_store %arg5[%c96, %c0_12], %10 {strides = array<i32>} : memref<288x384xf32, #tpu.memory_space<vmem>>, vector<32x384xf32>,
    %c0_13 = arith.constant 0 : index
    %c0_14 = arith.constant 0 : index
    %c21 = arith.constant 21 : index
    %12 = vector.load %arg1[%c0_13, %c0_14, %c21] : memref<1x32x440xf32, #tpu.memory_space<vmem>>, vector<1x32x384xf32>
    %13 = vector.shape_cast %12 : vector<1x32x384xf32> to vector<32x384xf32>
    %c128 = arith.constant 128 : index
    %c0_15 = arith.constant 0 : index
    %14 = vector.load %arg5[%c128, %c0_15] : memref<288x384xf32, #tpu.memory_space<vmem>>, vector<32x384xf32>
    tpu.vector_store %arg5[%c128, %c0_15], %13 {strides = array<i32>} : memref<288x384xf32, #tpu.memory_space<vmem>>, vector<32x384xf32>,
    %c0_16 = arith.constant 0 : index
    %c0_17 = arith.constant 0 : index
    %c22 = arith.constant 22 : index
    %15 = vector.load %arg1[%c0_16, %c0_17, %c22] : memref<1x32x440xf32, #tpu.memory_space<vmem>>, vector<1x32x384xf32>
    %16 = vector.shape_cast %15 : vector<1x32x384xf32> to vector<32x384xf32>
    %c160 = arith.constant 160 : index
    %c0_18 = arith.constant 0 : index
    %17 = vector.load %arg5[%c160, %c0_18] : memref<288x384xf32, #tpu.memory_space<vmem>>, vector<32x384xf32>
    tpu.vector_store %arg5[%c160, %c0_18], %16 {strides = array<i32>} : memref<288x384xf32, #tpu.memory_space<vmem>>, vector<32x384xf32>,
    %c0_19 = arith.constant 0 : index
    %c0_20 = arith.constant 0 : index
    %c40 = arith.constant 40 : index
    %18 = vector.load %arg1[%c0_19, %c0_20, %c40] : memref<1x32x440xf32, #tpu.memory_space<vmem>>, vector<1x32x384xf32>
    %19 = vector.shape_cast %18 : vector<1x32x384xf32> to vector<32x384xf32>
    %c192 = arith.constant 192 : index
    %c0_21 = arith.constant 0 : index
    %20 = vector.load %arg5[%c192, %c0_21] : memref<288x384xf32, #tpu.memory_space<vmem>>, vector<32x384xf32>
    tpu.vector_store %arg5[%c192, %c0_21], %19 {strides = array<i32>} : memref<288x384xf32, #tpu.memory_space<vmem>>, vector<32x384xf32>,
    %c0_22 = arith.constant 0 : index
    %c0_23 = arith.constant 0 : index
    %c41 = arith.constant 41 : index
    %21 = vector.load %arg1[%c0_22, %c0_23, %c41] : memref<1x32x440xf32, #tpu.memory_space<vmem>>, vector<1x32x384xf32>
    %22 = vector.shape_cast %21 : vector<1x32x384xf32> to vector<32x384xf32>
    %c224 = arith.constant 224 : index
    %c0_24 = arith.constant 0 : index
    %23 = vector.load %arg5[%c224, %c0_24] : memref<288x384xf32, #tpu.memory_space<vmem>>, vector<32x384xf32>
    tpu.vector_store %arg5[%c224, %c0_24], %22 {strides = array<i32>} : memref<288x384xf32, #tpu.memory_space<vmem>>, vector<32x384xf32>,
    %c0_25 = arith.constant 0 : index
    %c0_26 = arith.constant 0 : index
    %c42 = arith.constant 42 : index
    %24 = vector.load %arg1[%c0_25, %c0_26, %c42] : memref<1x32x440xf32, #tpu.memory_space<vmem>>, vector<1x32x384xf32>
    %25 = vector.shape_cast %24 : vector<1x32x384xf32> to vector<32x384xf32>
    %c256 = arith.constant 256 : index
    %c0_27 = arith.constant 0 : index
    %26 = vector.load %arg5[%c256, %c0_27] : memref<288x384xf32, #tpu.memory_space<vmem>>, vector<32x384xf32>
    tpu.vector_store %arg5[%c256, %c0_27], %25 {strides = array<i32>} : memref<288x384xf32, #tpu.memory_space<vmem>>, vector<32x384xf32>,
    %c0_28 = arith.constant 0 : index
    %c0_29 = arith.constant 0 : index
    %27 = vector.load %arg2[%c0_28, %c0_29] : memref<64x288xf32, #tpu.memory_space<vmem>>, vector<64x288xf32>
    %c0_30 = arith.constant 0 : index
    %c0_31 = arith.constant 0 : index
    %28 = vector.load %arg5[%c0_30, %c0_31] : memref<288x384xf32, #tpu.memory_space<vmem>>, vector<288x384xf32>
    %cst = arith.constant dense<0.000000e+00> : vector<64x384xf32>
    %29 = tpu.matmul %27, %28, %cst {dimension_numbers = #tpu.dot_dimension_numbers<[1], [0], [0], [1], [0, 0, 1, 1], [], []>} : vector<64x288xf32>, vector<288x384xf32>, vector<64x384xf32> -> vector<64x384xf32>
    %c0_32 = arith.constant 0 : index
    %c0_33 = arith.constant 0 : index
    %30 = vector.load %arg3[%c0_32, %c0_33] : memref<64x1xf32, #tpu.memory_space<vmem>>, vector<64x1xf32>
    %31 = vector.broadcast %30 : vector<64x1xf32> to vector<64x384xf32>
    %32 = arith.addf %29, %31 : vector<64x384xf32>
    %33 = math.tanh %32 : vector<64x384xf32>
    %c0_34 = arith.constant 0 : index
    %c0_35 = arith.constant 0 : index
    %c0_36 = arith.constant 0 : index
    %34 = vector.load %arg4[%c0_34, %c0_35, %c0_36] : memref<1x64x384xf32, #tpu.memory_space<vmem>>, vector<1x64x384xf32>
    %35 = vector.shape_cast %34 : vector<1x64x384xf32> to vector<64x384xf32>
    %36 = vector.shape_cast %33 : vector<64x384xf32> to vector<1x64x384xf32>
    tpu.vector_store %arg4[%c0_34, %c0_35, %c0_36], %36 {strides = array<i32>} : memref<1x64x384xf32, #tpu.memory_space<vmem>>, vector<1x64x384xf32>,
    return
  }
  func.func @transform_0(%arg0: i32) -> (i32, i32, i32) {
    %c0_i32 = arith.constant 0 : i32
    %c0_i32_0 = arith.constant 0 : i32
    %c0_i32_1 = arith.constant 0 : i32
    return %arg0, %c0_i32, %c0_i32_0 : i32, i32, i32
  }
  func.func @transform_1(%arg0: i32) -> (i32, i32) {
    %c0_i32 = arith.constant 0 : i32
    %c0_i32_0 = arith.constant 0 : i32
    %c0_i32_1 = arith.constant 0 : i32
    return %c0_i32, %c0_i32_0 : i32, i32
  }
  func.func @transform_2(%arg0: i32) -> (i32, i32) {
    %c0_i32 = arith.constant 0 : i32
    %c0_i32_0 = arith.constant 0 : i32
    %c0_i32_1 = arith.constant 0 : i32
    return %c0_i32, %c0_i32_0 : i32, i32
  }
  func.func @transform_3(%arg0: i32) -> (i32, i32, i32) {
    %c0_i32 = arith.constant 0 : i32
    %c0_i32_0 = arith.constant 0 : i32
    %c0_i32_1 = arith.constant 0 : i32
    return %arg0, %c0_i32, %c0_i32_0 : i32, i32, i32
  }
}

</mosaic_0001>

<bundles_post_ra>
// kernel: model_forward.1
= control target key start
LH: loop header
LB: loop body
LE: loop exit
PB: predicated region body
PF: predicated region fallthrough
CT: control target
= control target key end

     0   :  { %s2433_s12 = smov 0   ;;  %s3199_s0 = inlined_call_operand.vmem [shape: f32[2,32,440], index: 0, kind: input, shape index: {}]   ;;  %s3200_s1 = inlined_call_operand.vmem [shape: f32[64,288], index: 1, kind: input, shape index: {}]   ;;  %s3201_s2 = inlined_call_operand.vmem [shape: f32[64,1], index: 2, kind: input, shape index: {}]   ;;  %s3202_s3 = inlined_call_operand.vmem [shape: f32[2,64,384], index: 3, kind: output, shape index: {}]  }
   0x1 LB: > { %s1747_s13 = sadd.s32 4294967295, %s2401_s12   ;;  %p1751_p0 = scmp.ge.s32.totalorder %s2401_s12, 1  ;;  %s2401_s12 = sphi %s2433_s12, %s13_s12  }
   0x2   : > { %p137_p1 = scmp.lt.s32.totalorder %s2401_s12, 3 }
   0x4   : > { %p138_p2 = pnand %p1751_p0, %p137_p1 }
   0x5   : > { %p161_p3 = scmp.lt.s32.totalorder (!%p138_p2), %s1747_s13, 1  ;;  %s2403_s18 = smov (!%p138_p2), 127   ;;  %v2407_v28 = vmov (!%p138_p2), 0.0   ;;  %v2569_v37 = vld [vmem:[%s3200_s1 + $0x8] sm:$0xff] (!%p138_p2)  ;;  %vm259_vm0 = vcmask (!%p138_p2), 1039360   ;;  %vm966_vm1 = vcmask (!%p138_p2), 703488  }
   0x6   : > { %141 = sbr.rel (%p138_p2) target bundleno = 521 (0x209), region = 32  ;;  %s2404_s19 = smov (!%p138_p2), 86   ;;  %1385 = vmatprep.mubr.f32.mxu1 (!%p138_p2), %v2407_v28  ;;  %1272 = vmatprep.mubr.f32.mxu0 (!%p138_p2), %v2569_v37  ;;  %vm360_vm2 = vcmask (!%p138_p2), 1031168   ;;  %vm1183_vm3 = vcmask (!%p138_p2), 261120   ;;  %vm562_vm4 = vcmask (!%p138_p2), 875520   ;;  %vm461_vm5 = vcmask (!%p138_p2), 883712  }
   0x7   : > { %s2405_s20 = smov (!%p138_p2), 126   ;;  %s2406_s21 = smov (!%p138_p2), 107   ;;  %vm663_vm6 = vcmask (!%p138_p2), 867328   ;;  %vm764_vm7 = vcmask (!%p138_p2), 719872   ;;  %vm865_vm8 = vcmask (!%p138_p2), 711680  }
   0x8   : > { %s2408_s22 = smov (!%p138_p2), 108   ;;  %s2409_s23 = smov (!%p138_p2), 106  }
   0x9   : > { %s2410_s24 = smov (!%p138_p2), 88   ;;  %s2411_s25 = smov (!%p138_p2), 87  }
   0xd   : > { %s3210_s13 = smov (!%p161_p3, %s1747_s13), 1 }
   0xe   : > { %s1773_s14 = sshll.u32 %s3210_s13, 7  ;;  %s2006_s15 = smul.u32 192, %s3210_s13 }
   0xf   : > { %s2447_s17 = scalar_lea.vmem %s3199_s0, %s1773_s14 }
  0x10   : > { %v196_v0 = vld [vmem:[%s2447_s17 + $0x8] sm:$0xff]  ;;  %v2451_v1 = vld [vmem:[%s2447_s17 + $0x10] sm:$0xff]  ;;  %v195_v2 = vld [vmem:[%s2447_s17] sm:$0xff] }
  0x11   : > { %v2455_v3 = vpack.i.bf16 %v2451_v1, %v196_v0  ;;  %v199_v4 = vld [vmem:[%s2447_s17 + $0x20] sm:$0xff]  ;;  %v200_v5 = vld [vmem:[%s2447_s17 + $0x28] sm:$0xff]  ;;  %v2460_v6 = vld [vmem:[%s2447_s17 + $0x30] sm:$0xff] }
  0x12   : > { %v2462_v7 = vpack.i.bf16 %v199_v4, %v195_v2  ;;  %v204_v8 = vld [vmem:[%s2447_s17 + $0x48] sm:$0xff]  ;;  %v2466_v10 = vpack.i.bf16 %v200_v5, %v196_v0  ;;  %v1862_v11 = vpack.c.bf16 %v200_v5, %v196_v0  ;;  %v2030_v12 = vpack.i.bf16 %v2460_v6, %v200_v5  ;;  %v203_v16 = vld [vmem:[%s2447_s17 + $0x40] sm:$0xff]  ;;  %v2481_v19 = vld [vmem:[%s2447_s17 + $0x50] sm:$0xff] }
  0x13   : > { %v208_v9 = vld [vmem:[%s2447_s17 + $0x68] sm:$0xff]  ;;  %2026 = vrot.lane.b32.xlu0 %v2455_v3, %s2403_s18  ;;  %v1864_v14 = vpack.c.bf16 %v199_v4, %v195_v2  ;;  %v207_v17 = vld [vmem:[%s2447_s17 + $0x60] sm:$0xff]  ;;  %v2484_v20 = vld [vmem:[%s2447_s17 + $0x70] sm:$0xff]  ;;  %v2055_v21 = vpack.i.bf16 %v2481_v19, %v204_v8  ;;  %v1936_v29 = vpack.c.bf16 %v2460_v6, %v2451_v1 }
  0x14   : > { %v2471_v13 = vpack.i.bf16 %v208_v9, %v204_v8  ;;  %v1866_v15 = vpack.c.bf16 %v208_v9, %v204_v8  ;;  %2036 = vrot.lane.b32.xlu1 %v2462_v7, %s2403_s18  ;;  %1863 = vmatprep.subr.bf16.mxu0 %v1862_v11  ;;  %v1868_v18 = vpack.c.bf16 %v207_v17, %v203_v16  ;;  %v501_v24 = vld [vmem:[%s2447_s17 + $0x18] sm:$0xff] }
  0x15   : > { %1865 = vmatpush1.bf16.msra.mxu0 %v1864_v14  ;;  %v2060_v22 = vpack.i.bf16 %v2484_v20, %v208_v9  ;;  %v2492_v23 = vpack.i.bf16 %v207_v17, %v203_v16  ;;  %v2100_v25 = vpack.i.bf16 %v501_v24, %v2451_v1  ;;  %v505_v26 = vld [vmem:[%s2447_s17 + $0x38] sm:$0xff]  ;;  %v1940_v34 = vpack.c.bf16 %v2484_v20, %v2481_v19 }
  0x16   : > { %1867 = vmatprep.subr.bf16.mxu0 %v1866_v15  ;;  %v2105_v27 = vpack.i.bf16 %v505_v26, %v2460_v6  ;;  %v509_v30 = vld [vmem:[%s2447_s17 + $0x58] sm:$0xff]  ;;  %v2533_v35 = vpack.i.bf16 %v505_v26, %v501_v24 }
  0x17   : > { %2031 = vrot.lane.b32.xlu0 %v2030_v12, %s2403_s18  ;;  %v513_v31 = vld [vmem:[%s2447_s17 + $0x78] sm:$0xff]  ;;  %v2125_v32 = vpack.i.bf16 %v509_v30, %v2481_v19  ;;  %v2817_v19 = vld [vmem:[%s3200_s1 + $0xa0] sm:$0xff] }
  0x18   : > { %2041 = vrot.lane.b32.xlu1 %v2455_v3, %s2404_s19  ;;  %v2130_v33 = vpack.i.bf16 %v513_v31, %v2484_v20  ;;  %v2190_v36 = vpack.i.bf16 %v513_v31, %v509_v30 }
  0x19   : > { %1869 = vmatpush1.bf16.msra.mxu0 %v1868_v18 }
  0x1b   : > { %2046 = vrot.lane.b32.xlu0 %v2030_v12, %s2404_s19 }
  0x1c   : > { %2051 = vrot.lane.b32.xlu1 %v2462_v7, %s2404_s19 }
  0x1f   : > { %2056 = vrot.lane.b32.xlu0 %v2055_v21, %s2403_s18 }
  0x20   : > { %2061 = vrot.lane.b32.xlu1 %v2060_v22, %s2403_s18 }
  0x23   : > { %2066 = vrot.lane.b32.xlu0 %v2492_v23, %s2403_s18 }
  0x24   : > { %2071 = vrot.lane.b32.xlu1 %v2055_v21, %s2404_s19 }
  0x27   : > { %2076 = vrot.lane.b32.xlu0 %v2060_v22, %s2404_s19 }
  0x28   : > { %2081 = vrot.lane.b32.xlu1 %v2492_v23, %s2404_s19 }
  0x2b   : > { %2086 = vrot.lane.b32.xlu0 %v2455_v3, %s2405_s20 }
  0x2c   : > { %2091 = vrot.lane.b32.xlu1 %v2030_v12, %s2405_s20 }
  0x2f   : > { %2096 = vrot.lane.b32.xlu0 %v2462_v7, %s2405_s20 }
  0x30   : > { %2101 = vrot.lane.b32.xlu1 %v2100_v25, %s2406_s21 }
  0x33   : > { %2106 = vrot.lane.b32.xlu0 %v2105_v27, %s2406_s21 }
  0x34   : > { %2111 = vrot.lane.b32.xlu1 %v2055_v21, %s2405_s20 }
  0x37   : > { %2116 = vrot.lane.b32.xlu0 %v2060_v22, %s2405_s20 }
  0x38   : > { %2121 = vrot.lane.b32.xlu1 %v2492_v23, %s2405_s20 }
  0x3b   : > { %2126 = vrot.lane.b32.xlu0 %v2125_v32, %s2406_s21 }
  0x3c   : > { %2131 = vrot.lane.b32.xlu1 %v2130_v33, %s2406_s21 }
  0x3f   : > { %2136 = vrot.lane.b32.xlu0 %v2455_v3, %s2408_s22 }
  0x40   : > { %2141 = vrot.lane.b32.xlu1 %v2030_v12, %s2408_s22 }
  0x43   : > { %2146 = vrot.lane.b32.xlu0 %v2462_v7, %s2408_s22 }
  0x44   : > { %2151 = vrot.lane.b32.xlu1 %v2100_v25, %s2409_s23 }
  0x47   : > { %2156 = vrot.lane.b32.xlu0 %v2105_v27, %s2409_s23 }
  0x48   : > { %2161 = vrot.lane.b32.xlu1 %v2533_v35, %s2403_s18 }
  0x4b   : > { %2166 = vrot.lane.b32.xlu0 %v2055_v21, %s2408_s22 }
  0x4c   : > { %2171 = vrot.lane.b32.xlu1 %v2060_v22, %s2408_s22 }
  0x4f   : > { %2176 = vrot.lane.b32.xlu0 %v2492_v23, %s2408_s22 }
  0x50   : > { %2181 = vrot.lane.b32.xlu1 %v2125_v32, %s2409_s23 }
  0x53   : > { %2186 = vrot.lane.b32.xlu0 %v2130_v33, %s2409_s23 }
  0x54   : > { %2191 = vrot.lane.b32.xlu1 %v2190_v36, %s2403_s18  ;;  %s3151_s18 = scalar_lea.vmem %s3202_s3, %s2006_s15 }
  0x57   : > { %2196 = vrot.lane.b32.xlu0 %v2466_v10, %s2406_s21 }
  0x58   : > { %2201 = vrot.lane.b32.xlu1 %v2462_v7, %s2406_s21 }
  0x5b   : > { %2206 = vrot.lane.b32.xlu0 %v2100_v25, %s2410_s24 }
  0x5c   : > { %2211 = vrot.lane.b32.xlu1 %v2105_v27, %s2410_s24 }
  0x5f   : > { %2216 = vrot.lane.b32.xlu0 %v2533_v35, %s2405_s20 }
  0x60   : > { %2221 = vrot.lane.b32.xlu1 %v2471_v13, %s2406_s21 }
  0x63   : > { %2226 = vrot.lane.b32.xlu0 %v2492_v23, %s2406_s21 }
  0x64   : > { %2231 = vrot.lane.b32.xlu1 %v2125_v32, %s2410_s24 }
  0x67   : > { %2236 = vrot.lane.b32.xlu0 %v2130_v33, %s2410_s24 }
  0x68   : > { %2241 = vrot.lane.b32.xlu1 %v2190_v36, %s2405_s20 }
  0x6b   : > { %2246 = vrot.lane.b32.xlu0 %v2466_v10, %s2409_s23 }
  0x6c   : > { %2251 = vrot.lane.b32.xlu1 %v2462_v7, %s2409_s23 }
  0x6f   : > { %2256 = vrot.lane.b32.xlu0 %v2100_v25, %s2411_s25 }
  0x70   : > { %2261 = vrot.lane.b32.xlu1 %v2105_v27, %s2411_s25 }
  0x73   : > { %2266 = vrot.lane.b32.xlu0 %v2533_v35, %s2408_s22 }
  0x74   : > { %2271 = vrot.lane.b32.xlu1 %v2471_v13, %s2409_s23 }
  0x77   : > { %2276 = vrot.lane.b32.xlu0 %v2492_v23, %s2409_s23 }
  0x78   : > { %2281 = vrot.lane.b32.xlu1 %v2125_v32, %s2411_s25 }
  0x7b   : > { %2286 = vrot.lane.b32.xlu0 %v2130_v33, %s2411_s25 }
  0x7c   : > { %2291 = vrot.lane.b32.xlu1 %v2190_v36, %s2408_s22 }
  0x7f   : > { %2296 = vrot.lane.b32.xlu0 %v2466_v10, %s2410_s24 }
  0x80   : > { %2301 = vrot.lane.b32.xlu1 %v2462_v7, %s2410_s24 }
  0x83   : > { %2306 = vrot.lane.b32.xlu0 %v2471_v13, %s2410_s24 }
  0x84   : > { %2311 = vrot.lane.b32.xlu1 %v2492_v23, %s2410_s24 }
  0x85   : > { %v2581_v38 = vpop.permute.xlu0 %2026 }
  0x86   : > { %v2037_v39 = vpop.permute.xlu1 %2036  ;;  %v2029_v40 = vunpack.i.h.bf16 %v2581_v38  ;;  %v2028_v41 = vunpack.i.l.bf16 %v2581_v38 }
  0x87   : > { %v2038_v42 = vunpack.i.l.bf16 %v2037_v39  ;;  %2316 = vrot.lane.b32.xlu0 %v2466_v10, %s2411_s25  ;;  %v2039_v44 = vunpack.i.h.bf16 %v2037_v39 }
  0x88   : > { %2321 = vrot.lane.b32.xlu1 %v2462_v7, %s2411_s25  ;;  %v261_v48 = vsel %vm259_vm0, %v2028_v41, %v2029_v40 }
  0x89   : > { %v2589_v43 = vpop.permute.xlu0 %2031  ;;  %v260_v49 = vsel %vm259_vm0, %v2038_v42, %v2028_v41 }
  0x8a   : > { %v2034_v45 = vunpack.i.h.bf16 %v2589_v43  ;;  %v2033_v46 = vunpack.i.l.bf16 %v2589_v43  ;;  %v2593_v47 = vpop.permute.xlu1 %2041 }
  0x8b   : > { %2326 = vrot.lane.b32.xlu0 %v2471_v13, %s2411_s25  ;;  %v2044_v50 = vunpack.i.h.bf16 %v2593_v47  ;;  %v2043_v51 = vunpack.i.l.bf16 %v2593_v47 }
  0x8c   : > { %2331 = vrot.lane.b32.xlu1 %v2492_v23, %s2411_s25  ;;  %v264_v52 = vsel %vm259_vm0, %v2033_v46, %v2034_v45  ;;  %v263_v53 = vsel %vm259_vm0, %v2039_v44, %v2033_v46 }
  0x8d   : > { %v2609_v54 = vpop.permute.xlu0 %2046  ;;  %v1870_v55 = vpack.c.bf16 %v264_v52, %v261_v48  ;;  %v1872_v56 = vpack.c.bf16 %v263_v53, %v260_v49  ;;  %v968_v62 = vsel %vm966_vm1, %v2043_v51, %v2044_v50 }
  0x8e   : > { %v3205_v57 = vunpack.i.h.bf16 %v2609_v54  ;;  %v2048_v58 = vunpack.i.l.bf16 %v2609_v54  ;;  %v2052_v59 = vpop.permute.xlu1 %2051 }
  0x8f   : > { %v2054_v60 = vunpack.i.h.bf16 %v2052_v59  ;;  %v2053_v61 = vunpack.i.l.bf16 %v2052_v59  ;;  %2336 = vrot.lane.b32.xlu0 %v2533_v35, %s2404_s19  ;;  %1871 = vmatprep.subr.bf16.mxu0 %v1870_v55 }
  0x90   : > { %2341 = vrot.lane.b32.xlu1 %v2190_v36, %s2404_s19  ;;  %1873 = vmatpush1.bf16.msra.mxu0 %v1872_v56  ;;  %v971_v63 = vsel %vm966_vm1, %v2048_v58, %v3205_v57  ;;  %v2670_v56 = vld [vmem:[%s3200_s1 + $0x10] sm:$0xff] }
  0x91   : > { %v2622_v0 = vpop.permute.xlu0 %2056  ;;  %v1926_v2 = vpack.c.bf16 %v971_v63, %v968_v62  ;;  %v967_v3 = vsel %vm966_vm1, %v2053_v61, %v2043_v51  ;;  %v970_v4 = vsel %vm966_vm1, %v2054_v60, %v2048_v58 }
  0x92   : > { %v2059_v5 = vunpack.i.h.bf16 %v2622_v0  ;;  %v2058_v7 = vunpack.i.l.bf16 %v2622_v0  ;;  %v2628_v8 = vpop.permute.xlu1 %2061  ;;  %v1928_v9 = vpack.c.bf16 %v970_v4, %v967_v3  ;;  %v1136_v3 = vld [vmem:[%s3201_s2 + $0x8] sm:$0xff] }
  0x93   : > { %v2064_v10 = vunpack.i.h.bf16 %v2628_v8  ;;  %v2063_v11 = vunpack.i.l.bf16 %v2628_v8  ;;  %1927 = vmatprep.subr.bf16.mxu1 %v1926_v2  ;;  %v1135_v2 = vld [vmem:[%s3201_s2] sm:$0xff] }
  0x94   : > { %1929 = vmatpush1.bf16.msra.mxu1 %v1928_v9  ;;  %v267_v12 = vsel %vm259_vm0, %v2058_v7, %v2059_v5 }
  0x95   : > { %v2067_v13 = vpop.permute.xlu0 %2066  ;;  %v270_v14 = vsel %vm259_vm0, %v2063_v11, %v2064_v10 }
  0x96   : > { %v2069_v15 = vunpack.i.h.bf16 %v2067_v13  ;;  %v2068_v16 = vunpack.i.l.bf16 %v2067_v13  ;;  %v2638_v17 = vpop.permute.xlu1 %2071  ;;  %v1874_v18 = vpack.c.bf16 %v270_v14, %v267_v12  ;;  %v2693_v12 = vld [vmem:[%s3200_s1 + $0x28] sm:$0xff] }
  0x97   : > { %v3204_v21 = vunpack.i.h.bf16 %v2638_v17  ;;  %v2073_v22 = vunpack.i.l.bf16 %v2638_v17 }
  0x98   : > { %1875 = vmatprep.subr.bf16.mxu0 %v1874_v18  ;;  %v266_v23 = vsel %vm259_vm0, %v2068_v16, %v2058_v7  ;;  %v269_v24 = vsel %vm259_vm0, %v2069_v15, %v2063_v11  ;;  %v2412_v15 = vmov 0  }
  0x99   : > { %v2644_v25 = vpop.permute.xlu0 %2076  ;;  %v1876_v26 = vpack.c.bf16 %v269_v24, %v266_v23  ;;  %v974_v35 = vsel %vm966_vm1, %v2073_v22, %v3204_v21  ;;  %2345 = vset.pattern.permute.xlu0 %v2412_v15  ;;  %2346 = vset.pattern.permute.xlu1 %v2412_v15  ;;  %v1137_v23 = vld [vmem:[%s3201_s2 + $0x10] sm:$0xff]  ;;  %v1138_v24 = vld [vmem:[%s3201_s2 + $0x18] sm:$0xff] }
  0x9a   : > { %v3203_v27 = vunpack.i.h.bf16 %v2644_v25  ;;  %v2078_v30 = vunpack.i.l.bf16 %v2644_v25  ;;  %v2082_v31 = vpop.permute.xlu1 %2081  ;;  %1145 = vperm.xlu0 %2345, %v1135_v2   ;;  %1150 = vperm.xlu1 %2346, %v1136_v3   ;;  %v1142_v15 = vld [vmem:[%s3201_s2 + $0x38] sm:$0xff] }
  0x9b   : > { %v2084_v32 = vunpack.i.h.bf16 %v2082_v31  ;;  %v2083_v33 = vunpack.i.l.bf16 %v2082_v31  ;;  %1877 = vmatpush1.bf16.msra.mxu0 %v1876_v26 }
  0x9c   : > { %v977_v36 = vsel %vm966_vm1, %v2078_v30, %v3203_v27 }
  0x9d   : > { %v2654_v39 = vpop.permute.xlu0 %2086  ;;  %v1930_v41 = vpack.c.bf16 %v977_v36, %v974_v35  ;;  %v973_v42 = vsel %vm966_vm1, %v2083_v33, %v2073_v22  ;;  %v976_v44 = vsel %vm966_vm1, %v2084_v32, %v2078_v30  ;;  %v2721_v33 = vld [vmem:[%s3200_s1 + $0x40] sm:$0xff] }
  0x9e   : > { %v2089_v46 = vunpack.i.h.bf16 %v2654_v39  ;;  %v2088_v48 = vunpack.i.l.bf16 %v2654_v39  ;;  %v2660_v49 = vpop.permute.xlu1 %2091  ;;  %v1932_v51 = vpack.c.bf16 %v976_v44, %v973_v42  ;;  %1155 = vperm.xlu1 %2346, %v1137_v23   ;;  %1160 = vperm.xlu0 %2345, %v1138_v24   ;;  %v2775_v23 = vld [vmem:[%s3200_s1 + $0x70] sm:$0xff] }
  0x9f   : > { %v2094_v52 = vunpack.i.h.bf16 %v2660_v49  ;;  %v2093_v53 = vunpack.i.l.bf16 %v2660_v49  ;;  %1931 = vmatprep.subr.bf16.mxu1 %v1930_v41 }
  0xa0   : > { %1933 = vmatpush1.bf16.msra.mxu1 %v1932_v51  ;;  %v362_v55 = vsel %vm360_vm2, %v2088_v48, %v2089_v46 }
  0xa1   : > { %v2097_v58 = vpop.permute.xlu0 %2096  ;;  %v365_v59 = vsel %vm360_vm2, %v2093_v53, %v2094_v52 }
  0xa2   : > { %v2099_v60 = vunpack.i.h.bf16 %v2097_v58  ;;  %v2098_v61 = vunpack.i.l.bf16 %v2097_v58  ;;  %v2675_v62 = vpop.permute.xlu1 %2101  ;;  %v1878_v63 = vpack.c.bf16 %v365_v59, %v362_v55  ;;  %v1140_v55 = vld [vmem:[%s3201_s2 + $0x28] sm:$0xff] }
  0xa3   : > { %1755 = vmatmul.mubr.msk.f32.vlgmr.msra.gmra.mrb[0].mxu1 %vm1183_vm3, %v2670_v56  ;;  %v2104_v4 = vunpack.i.h.bf16 %v2675_v62  ;;  %v2103_v7 = vunpack.i.l.bf16 %v2675_v62  ;;  %1170 = vperm.xlu0 %2345, %v1140_v55  }
  0xa4   : > { %1879 = vmatprep.subr.bf16.mxu0 %v1878_v63  ;;  %v361_v9 = vsel %vm360_vm2, %v2098_v61, %v2088_v48  ;;  %v364_v11 = vsel %vm360_vm2, %v2099_v60, %v2093_v53  ;;  %1391 = vmatprep.mubr.f32.mxu1 %v2407_v28  ;;  %v1139_v53 = vld [vmem:[%s3201_s2 + $0x20] sm:$0xff]  ;;  %v2748_v60 = vld [vmem:[%s3200_s1 + $0x58] sm:$0xff] }
  0xa5   : > { %v2695_v13 = vpop.permute.xlu0 %2106  ;;  %v1880_v14 = vpack.c.bf16 %v364_v11, %v361_v9  ;;  %v565_v31 = vsel %vm562_vm4, %v2103_v7, %v2104_v4  ;;  %1165 = vperm.xlu1 %2346, %v1139_v53   ;;  %v2797_v53 = vld [vmem:[%s3200_s1 + $0x88] sm:$0xff] }
  0xa6   : > { %v2109_v16 = vunpack.i.h.bf16 %v2695_v13  ;;  %v2108_v18 = vunpack.i.l.bf16 %v2695_v13  ;;  %v2699_v22 = vpop.permute.xlu1 %2111 }
  0xa7   : > { %1881 = vmatpush1.bf16.msra.mxu0 %v1880_v14  ;;  %1756 = vmatmul.mubr.msk.f32.gmra.mrb[2].mxu1 %vm1183_vm3, %v2693_v12  ;;  %v2114_v26 = vunpack.i.h.bf16 %v2699_v22  ;;  %v2113_v30 = vunpack.i.l.bf16 %v2699_v22  ;;  %v1141_v14 = vld [vmem:[%s3201_s2 + $0x30] sm:$0xff] }
  0xa8   : > { %v568_v32 = vsel %vm562_vm4, %v2108_v18, %v2109_v16  ;;  %1397 = vmatprep.mubr.f32.mxu1 %v2407_v28  ;;  %1180 = vperm.xlu0 %2345, %v1142_v15  }
  0xa9   : > { %v2723_v35 = vpop.permute.xlu0 %2116  ;;  %v1934_v36 = vpack.c.bf16 %v568_v32, %v565_v31  ;;  %v368_v58 = vsel %vm360_vm2, %v2113_v30, %v2114_v26  ;;  %1175 = vperm.xlu1 %2346, %v1141_v14  }
  0xaa   : > { %v2119_v41 = vunpack.i.h.bf16 %v2723_v35  ;;  %v2118_v42 = vunpack.i.l.bf16 %v2723_v35  ;;  %v2122_v44 = vpop.permute.xlu1 %2121 }
  0xab   : > { %v2124_v48 = vunpack.i.h.bf16 %v2122_v44  ;;  %v2123_v51 = vunpack.i.l.bf16 %v2122_v44  ;;  %1935 = vmatprep.subr.bf16.mxu1 %v1934_v36  ;;  %1757 = vmatmul.mubr.msk.f32.gmra.mrb[4].mxu1 %vm1183_vm3, %v2721_v33 }
  0xac   : > { %v371_v59 = vsel %vm360_vm2, %v2118_v42, %v2119_v41  ;;  %1937 = vmatpush3.bf16.msra.mxu1 %v1936_v29  ;;  %1403 = vmatprep.mubr.f32.mxu1 %v2407_v28 }
  0xad   : > { %v2750_v61 = vpop.permute.xlu0 %2126  ;;  %v1882_v63 = vpack.c.bf16 %v371_v59, %v368_v58  ;;  %v367_v2 = vsel %vm360_vm2, %v2123_v51, %v2113_v30  ;;  %v370_v3 = vsel %vm360_vm2, %v2124_v48, %v2118_v42 }
  0xae   : > { %v2129_v4 = vunpack.i.h.bf16 %v2750_v61  ;;  %v2128_v9 = vunpack.i.l.bf16 %v2750_v61  ;;  %v2756_v1 = vpop.permute.xlu1 %2131  ;;  %v1884_v6 = vpack.c.bf16 %v370_v3, %v367_v2 }
  0xaf   : > { %v2134_v29 = vunpack.i.h.bf16 %v2756_v1  ;;  %v2133_v11 = vunpack.i.l.bf16 %v2756_v1  ;;  %1883 = vmatprep.subr.bf16.mxu0 %v1882_v63  ;;  %1758 = vmatmul.mubr.msk.f32.gmra.mrb[6].mxu1 %vm1183_vm3, %v2748_v60 }
  0xb0   : > { %1885 = vmatpush1.bf16.msra.mxu0 %v1884_v6  ;;  %v571_v16 = vsel %vm562_vm4, %v2128_v9, %v2129_v4  ;;  %1409 = vmatprep.mubr.f32.mxu1 %v2407_v28 }
  0xb1   : > { %v2777_v24 = vpop.permute.xlu0 %2136  ;;  %v574_v30 = vsel %vm562_vm4, %v2133_v11, %v2134_v29 }
  0xb2   : > { %v2139_v31 = vunpack.i.h.bf16 %v2777_v24  ;;  %v2138_v32 = vunpack.i.l.bf16 %v2777_v24  ;;  %v2784_v36 = vpop.permute.xlu1 %2141  ;;  %v1938_v42 = vpack.c.bf16 %v574_v30, %v571_v16 }
  0xb3   : > { %v2144_v44 = vunpack.i.h.bf16 %v2784_v36  ;;  %v2143_v48 = vunpack.i.l.bf16 %v2784_v36  ;;  %1759 = vmatmul.mubr.msk.f32.gmra.mrb[8].mxu1 %vm1183_vm3, %v2775_v23 }
  0xb4   : > { %1939 = vmatprep.subr.bf16.mxu1 %v1938_v42  ;;  %v463_v51 = vsel %vm461_vm5, %v2138_v32, %v2139_v31  ;;  %1415 = vmatprep.mubr.f32.mxu1 %v2407_v28 }
  0xb5   : > { %v2147_v55 = vpop.permute.xlu0 %2146  ;;  %v466_v58 = vsel %vm461_vm5, %v2143_v48, %v2144_v44  ;;  %1941 = vmatpush3.bf16.msra.mxu1 %v1940_v34 }
  0xb6   : > { %v2149_v59 = vunpack.i.h.bf16 %v2147_v55  ;;  %v2148_v63 = vunpack.i.l.bf16 %v2147_v55  ;;  %v2805_v2 = vpop.permute.xlu1 %2151  ;;  %v1886_v3 = vpack.c.bf16 %v466_v58, %v463_v51  ;;  %v2835_v55 = vld [vmem:[%s3200_s1 + $0xb8] sm:$0xff] }
  0xb7   : > { %1760 = vmatmul.mubr.msk.f32.gmra.mrb[10].mxu1 %vm1183_vm3, %v2797_v53  ;;  %v2154_v4 = vunpack.i.h.bf16 %v2805_v2  ;;  %v2153_v6 = vunpack.i.l.bf16 %v2805_v2 }
  0xb8   : > { %1887 = vmatprep.subr.bf16.mxu0 %v1886_v3  ;;  %v462_v29 = vsel %vm461_vm5, %v2148_v63, %v2138_v32  ;;  %v465_v14 = vsel %vm461_vm5, %v2149_v59, %v2143_v48  ;;  %1421 = vmatprep.mubr.f32.mxu1 %v2407_v28 }
  0xb9   : > { %v2819_v20 = vpop.permute.xlu0 %2156  ;;  %v1888_v34 = vpack.c.bf16 %v465_v14, %v462_v29  ;;  %v666_v48 = vsel %vm663_vm6, %v2153_v6, %v2154_v4 }
  0xba   : > { %v2159_v15 = vunpack.i.h.bf16 %v2819_v20  ;;  %v2158_v16 = vunpack.i.l.bf16 %v2819_v20  ;;  %v2162_v30 = vpop.permute.xlu1 %2161 }
  0xbb   : > { %v2164_v42 = vunpack.i.h.bf16 %v2162_v30  ;;  %v2163_v32 = vunpack.i.l.bf16 %v2162_v30  ;;  %1889 = vmatpush1.bf16.msra.mxu0 %v1888_v34  ;;  %1761 = vmatmul.mubr.msk.f32.gmra.mrb[12].mxu1 %vm1183_vm3, %v2817_v19 }
  0xbc   : > { %v669_v51 = vsel %vm663_vm6, %v2158_v16, %v2159_v15  ;;  %1427 = vmatprep.mubr.f32.mxu1 %v2407_v28 }
  0xbd   : > { %v265_v58 = vsel %vm259_vm0, %v2034_v45, %v2164_v42  ;;  %v262_v59 = vsel %vm259_vm0, %v2029_v40, %v2163_v32  ;;  %v2843_v63 = vpop.permute.xlu0 %2166  ;;  %v1942_v3 = vpack.c.bf16 %v669_v51, %v666_v48 }
  0xbe   : > { %v1944_v4 = vpack.c.bf16 %v265_v58, %v262_v59  ;;  %v2169_v29 = vunpack.i.h.bf16 %v2843_v63  ;;  %v2168_v28 = vunpack.i.l.bf16 %v2843_v63  ;;  %v2847_v14 = vpop.permute.xlu1 %2171 }
  0xbf   : > { %v2174_v34 = vunpack.i.h.bf16 %v2847_v14  ;;  %v2173_v43 = vunpack.i.l.bf16 %v2847_v14  ;;  %1943 = vmatprep.subr.bf16.mxu1 %v1942_v3  ;;  %1762 = vmatmul.mubr.msk.f32.gmra.mrb[14].mxu1 %vm1183_vm3, %v2835_v55  ;;  %v3003_v14 = vld [vmem:[%s3200_s1] sm:$0xff] }
  0xc0   : > { %1945 = vmatpush3.bf16.msra.mxu1 %v1944_v4  ;;  %v469_v38 = vsel %vm461_vm5, %v2168_v28, %v2169_v29  ;;  %1498 = vmatprep.mubr.f32.mxu1 %v2569_v37 }
  0xc1   : > { %v2177_v40 = vpop.permute.xlu0 %2176  ;;  %v472_v45 = vsel %vm461_vm5, %v2173_v43, %v2174_v34 }
  0xc2   : > { %v2179_v15 = vunpack.i.h.bf16 %v2177_v40  ;;  %v2178_v30 = vunpack.i.l.bf16 %v2177_v40  ;;  %v2860_v42 = vpop.permute.xlu1 %2181  ;;  %v1890_v32 = vpack.c.bf16 %v472_v45, %v469_v38 }
  0xc3   : > { %v2184_v48 = vunpack.i.h.bf16 %v2860_v42  ;;  %v2183_v51 = vunpack.i.l.bf16 %v2860_v42 }
  0xc4   : > { %1891 = vmatprep.subr.bf16.mxu0 %v1890_v32  ;;  %v468_v58 = vsel %vm461_vm5, %v2178_v30, %v2168_v28  ;;  %v471_v59 = vsel %vm461_vm5, %v2179_v15, %v2173_v43 }
  0xc5   : > { %v2866_v37 = vpop.permute.xlu0 %2186  ;;  %v1892_v3 = vpack.c.bf16 %v471_v59, %v468_v58  ;;  %v672_v38 = vsel %vm663_vm6, %v2183_v51, %v2184_v48 }
  0xc6   : > { %v2189_v4 = vunpack.i.h.bf16 %v2866_v37  ;;  %v2188_v27 = vunpack.i.l.bf16 %v2866_v37  ;;  %v2192_v40 = vpop.permute.xlu1 %2191 }
  0xc7   : > { %v2194_v21 = vunpack.i.h.bf16 %v2192_v40  ;;  %v2193_v57 = vunpack.i.l.bf16 %v2192_v40  ;;  %1893 = vmatpush1.bf16.msra.mxu0 %v1892_v3 }
  0xc8   : > { %v675_v28 = vsel %vm663_vm6, %v2188_v27, %v2189_v4 }
  0xc9   : > { %v268_v43 = vsel %vm259_vm0, %v2059_v5, %v2193_v57  ;;  %v271_v45 = vsel %vm259_vm0, %v2064_v10, %v2194_v21  ;;  %v2197_v15 = vpop.permute.xlu0 %2196  ;;  %v1946_v30 = vpack.c.bf16 %v675_v28, %v672_v38 }
  0xca   : > { %v1948_v32 = vpack.c.bf16 %v271_v45, %v268_v43  ;;  %v2199_v58 = vunpack.i.h.bf16 %v2197_v15  ;;  %v2198_v59 = vunpack.i.l.bf16 %v2197_v15  ;;  %v2202_v3 = vpop.permute.xlu1 %2201 }
  0xcb   : > { %v2204_v40 = vunpack.i.h.bf16 %v2202_v3  ;;  %v2203_v48 = vunpack.i.l.bf16 %v2202_v3  ;;  %1947 = vmatprep.subr.bf16.mxu1 %v1946_v30 }
  0xcc   : > { %1949 = vmatpush3.bf16.msra.mxu1 %v1948_v32  ;;  %v564_v0 = vsel %vm562_vm4, %v2198_v59, %v2103_v7  ;;  %v567_v57 = vsel %vm562_vm4, %v2199_v58, %v2108_v18 }
  0xcd   : > { %v2888_v5 = vpop.permute.xlu0 %2206  ;;  %v1894_v8 = vpack.c.bf16 %v567_v57, %v564_v0  ;;  %v563_v10 = vsel %vm562_vm4, %v2203_v48, %v2198_v59  ;;  %v566_v21 = vsel %vm562_vm4, %v2204_v40, %v2199_v58 }
  0xce   : > { %v2209_v4 = vunpack.i.h.bf16 %v2888_v5  ;;  %v2208_v38 = vunpack.i.l.bf16 %v2888_v5  ;;  %v2894_v28 = vpop.permute.xlu1 %2211  ;;  %v1896_v62 = vpack.c.bf16 %v566_v21, %v563_v10  ;;  %v3010_v5 = vld [vmem:[%s3200_s1 + $0x20] sm:$0xff] }
  0xcf   : > { %v2214_v7 = vunpack.i.h.bf16 %v2894_v28  ;;  %v2213_v13 = vunpack.i.l.bf16 %v2894_v28  ;;  %1895 = vmatprep.subr.bf16.mxu0 %v1894_v8 }
  0xd0   : > { %1897 = vmatpush1.bf16.msra.mxu0 %v1896_v62  ;;  %v767_v18 = vsel %vm764_vm7, %v2208_v38, %v2209_v4 }
  0xd1   : > { %v2217_v43 = vpop.permute.xlu0 %2216  ;;  %v770_v45 = vsel %vm764_vm7, %v2213_v13, %v2214_v7 }
  0xd2   : > { %v2219_v15 = vunpack.i.h.bf16 %v2217_v43  ;;  %v2218_v30 = vunpack.i.l.bf16 %v2217_v43  ;;  %v2222_v32 = vpop.permute.xlu1 %2221  ;;  %v1950_v58 = vpack.c.bf16 %v770_v45, %v767_v18 }
  0xd3   : > { %v2224_v59 = vunpack.i.h.bf16 %v2222_v32  ;;  %v2223_v3 = vunpack.i.l.bf16 %v2222_v32 }
  0xd4   : > { %v363_v40 = vsel %vm360_vm2, %v2089_v46, %v2218_v30  ;;  %v366_v48 = vsel %vm360_vm2, %v2094_v52, %v2219_v15  ;;  %1951 = vmatprep.subr.bf16.mxu1 %v1950_v58 }
  0xd5   : > { %v1952_v0 = vpack.c.bf16 %v366_v48, %v363_v40  ;;  %v2227_v57 = vpop.permute.xlu0 %2226  ;;  %v570_v8 = vsel %vm562_vm4, %v2223_v3, %v2128_v9  ;;  %v573_v10 = vsel %vm562_vm4, %v2224_v59, %v2133_v11 }
  0xd6   : > { %v2229_v21 = vunpack.i.h.bf16 %v2227_v57  ;;  %v2228_v4 = vunpack.i.l.bf16 %v2227_v57  ;;  %v2916_v39 = vpop.permute.xlu1 %2231  ;;  %v1898_v46 = vpack.c.bf16 %v573_v10, %v570_v8 }
  0xd7   : > { %1953 = vmatpush3.bf16.msra.mxu1 %v1952_v0  ;;  %v2234_v49 = vunpack.i.h.bf16 %v2916_v39  ;;  %v2233_v52 = vunpack.i.l.bf16 %v2916_v39  ;;  %v3030_v39 = vld [vmem:[%s3200_s1 + $0x38] sm:$0xff] }
  0xd8   : > { %1899 = vmatprep.subr.bf16.mxu0 %v1898_v46  ;;  %v569_v62 = vsel %vm562_vm4, %v2228_v4, %v2223_v3  ;;  %v572_v61 = vsel %vm562_vm4, %v2229_v21, %v2224_v59 }
  0xd9   : > { %v2922_v9 = vpop.permute.xlu0 %2236  ;;  %v1900_v1 = vpack.c.bf16 %v572_v61, %v569_v62  ;;  %v773_v15 = vsel %vm764_vm7, %v2233_v52, %v2234_v49 }
  0xda   : > { %v2239_v11 = vunpack.i.h.bf16 %v2922_v9  ;;  %v2238_v7 = vunpack.i.l.bf16 %v2922_v9  ;;  %v2242_v18 = vpop.permute.xlu1 %2241 }
  0xdb   : > { %v2244_v43 = vunpack.i.h.bf16 %v2242_v18  ;;  %v2243_v45 = vunpack.i.l.bf16 %v2242_v18  ;;  %1901 = vmatpush1.bf16.msra.mxu0 %v1900_v1 }
  0xdc   : > { %v776_v30 = vsel %vm764_vm7, %v2238_v7, %v2239_v11 }
  0xdd   : > { %v372_v32 = vsel %vm360_vm2, %v2119_v41, %v2244_v43  ;;  %v369_v58 = vsel %vm360_vm2, %v2114_v26, %v2243_v45  ;;  %v2247_v59 = vpop.permute.xlu0 %2246  ;;  %v1954_v3 = vpack.c.bf16 %v776_v30, %v773_v15 }
  0xde   : > { %v1956_v40 = vpack.c.bf16 %v372_v32, %v369_v58  ;;  %v2249_v48 = vunpack.i.h.bf16 %v2247_v59  ;;  %v2248_v0 = vunpack.i.l.bf16 %v2247_v59  ;;  %v2252_v57 = vpop.permute.xlu1 %2251 }
  0xdf   : > { %v2254_v8 = vunpack.i.h.bf16 %v2252_v57  ;;  %v2253_v10 = vunpack.i.l.bf16 %v2252_v57  ;;  %1955 = vmatprep.subr.bf16.mxu1 %v1954_v3 }
  0xe0   : > { %1957 = vmatpush3.bf16.msra.mxu1 %v1956_v40  ;;  %v665_v35 = vsel %vm663_vm6, %v2248_v0, %v2153_v6  ;;  %v668_v22 = vsel %vm663_vm6, %v2249_v48, %v2158_v16 }
  0xe1   : > { %v2944_v41 = vpop.permute.xlu0 %2256  ;;  %v1902_v26 = vpack.c.bf16 %v668_v22, %v665_v35  ;;  %v664_v21 = vsel %vm663_vm6, %v2253_v10, %v2248_v0  ;;  %v667_v4 = vsel %vm663_vm6, %v2254_v8, %v2249_v48 }
  0xe2   : > { %v2259_v46 = vunpack.i.h.bf16 %v2944_v41  ;;  %v2258_v49 = vunpack.i.l.bf16 %v2944_v41  ;;  %v2950_v62 = vpop.permute.xlu1 %2261  ;;  %v1904_v2 = vpack.c.bf16 %v667_v4, %v664_v21  ;;  %v1013_v41 = vld [vmem:[%s3200_s1 + $0x50] sm:$0xff] }
  0xe3   : > { %v2264_v6 = vunpack.i.h.bf16 %v2950_v62  ;;  %v2263_v20 = vunpack.i.l.bf16 %v2950_v62  ;;  %1903 = vmatprep.subr.bf16.mxu0 %v1902_v26 }
  0xe4   : > { %1905 = vmatpush1.bf16.msra.mxu0 %v1904_v2  ;;  %v868_v16 = vsel %vm865_vm8, %v2258_v49, %v2259_v46 }
  0xe5   : > { %v2267_v61 = vpop.permute.xlu0 %2266  ;;  %v871_v1 = vsel %vm865_vm8, %v2263_v20, %v2264_v6 }
  0xe6   : > { %v2269_v11 = vunpack.i.h.bf16 %v2267_v61  ;;  %v2268_v18 = vunpack.i.l.bf16 %v2267_v61  ;;  %v2272_v43 = vpop.permute.xlu1 %2271  ;;  %v1958_v45 = vpack.c.bf16 %v871_v1, %v868_v16 }
  0xe7   : > { %v2274_v15 = vunpack.i.h.bf16 %v2272_v43  ;;  %v2273_v30 = vunpack.i.l.bf16 %v2272_v43 }
  0xe8   : > { %v464_v32 = vsel %vm461_vm5, %v2139_v31, %v2268_v18  ;;  %v467_v58 = vsel %vm461_vm5, %v2144_v44, %v2269_v11  ;;  %1959 = vmatprep.subr.bf16.mxu1 %v1958_v45 }
  0xe9   : > { %v1960_v59 = vpack.c.bf16 %v467_v58, %v464_v32  ;;  %v2277_v3 = vpop.permute.xlu0 %2276  ;;  %v671_v40 = vsel %vm663_vm6, %v2273_v30, %v2183_v51  ;;  %v674_v48 = vsel %vm663_vm6, %v2274_v15, %v2188_v27 }
  0xea   : > { %v2279_v0 = vunpack.i.h.bf16 %v2277_v3  ;;  %v2278_v57 = vunpack.i.l.bf16 %v2277_v3  ;;  %v2972_v24 = vpop.permute.xlu1 %2281  ;;  %v1906_v31 = vpack.c.bf16 %v674_v48, %v671_v40 }
  0xeb   : > { %1961 = vmatpush3.bf16.msra.mxu1 %v1960_v59  ;;  %v2284_v36 = vunpack.i.h.bf16 %v2972_v24  ;;  %v2283_v44 = vunpack.i.l.bf16 %v2972_v24  ;;  %v1016_v24 = vld [vmem:[%s3200_s1 + $0x68] sm:$0xff] }
  0xec   : > { %1907 = vmatprep.subr.bf16.mxu0 %v1906_v31  ;;  %v670_v8 = vsel %vm663_vm6, %v2278_v57, %v2273_v30  ;;  %v673_v42 = vsel %vm663_vm6, %v2279_v0, %v2274_v15  ;;  %v3023_v0 = vld [vmem:[%s3200_s1 + $0x18] sm:$0xff] }
  0xed   : > { %v2978_v51 = vpop.permute.xlu0 %2286  ;;  %v1908_v37 = vpack.c.bf16 %v673_v42, %v670_v8  ;;  %v874_v21 = vsel %vm865_vm8, %v2283_v44, %v2284_v36 }
  0xee   : > { %v2289_v27 = vunpack.i.h.bf16 %v2978_v51  ;;  %v2288_v10 = vunpack.i.l.bf16 %v2978_v51  ;;  %v2292_v35 = vpop.permute.xlu1 %2291 }
  0xef   : > { %v2294_v22 = vunpack.i.h.bf16 %v2292_v35  ;;  %v2293_v26 = vunpack.i.l.bf16 %v2292_v35  ;;  %1909 = vmatpush1.bf16.msra.mxu0 %v1908_v37 }
  0xf0   : > { %v877_v4 = vsel %vm865_vm8, %v2288_v10, %v2289_v27 }
  0xf1   : > { %v470_v46 = vsel %vm461_vm5, %v2169_v29, %v2293_v26  ;;  %v473_v2 = vsel %vm461_vm5, %v2174_v34, %v2294_v22  ;;  %v2297_v6 = vpop.permute.xlu0 %2296  ;;  %v1962_v16 = vpack.c.bf16 %v877_v4, %v874_v21  ;;  %v1009_v26 = vld [vmem:[%s3200_s1 + $0x30] sm:$0xff] }
  0xf2   : > { %v1964_v61 = vpack.c.bf16 %v473_v2, %v470_v46  ;;  %v2299_v1 = vunpack.i.h.bf16 %v2297_v6  ;;  %v2298_v11 = vunpack.i.l.bf16 %v2297_v6  ;;  %v2302_v18 = vpop.permute.xlu1 %2301 }
  0xf3   : > { %v2304_v43 = vunpack.i.h.bf16 %v2302_v18  ;;  %v2303_v45 = vunpack.i.l.bf16 %v2302_v18  ;;  %1963 = vmatprep.subr.bf16.mxu1 %v1962_v16  ;;  %v1012_v18 = vld [vmem:[%s3200_s1 + $0x48] sm:$0xff] }
  0xf4   : > { %1965 = vmatpush3.bf16.msra.mxu1 %v1964_v61  ;;  %v766_v63 = vsel %vm764_vm7, %v2298_v11, %v2208_v38  ;;  %v769_v29 = vsel %vm764_vm7, %v2299_v1, %v2213_v13 }
  0xf5   : > { %v2307_v34 = vpop.permute.xlu0 %2306  ;;  %v1910_v15 = vpack.c.bf16 %v769_v29, %v766_v63  ;;  %v765_v30 = vsel %vm764_vm7, %v2303_v45, %v2298_v11  ;;  %v768_v32 = vsel %vm764_vm7, %v2304_v43, %v2299_v1 }
  0xf6   : > { %v2309_v38 = vunpack.i.h.bf16 %v2307_v34  ;;  %v2308_v28 = vunpack.i.l.bf16 %v2307_v34  ;;  %v2312_v58 = vpop.permute.xlu1 %2311  ;;  %v1912_v13 = vpack.c.bf16 %v768_v32, %v765_v30  ;;  %v1015_v32 = vld [vmem:[%s3200_s1 + $0x60] sm:$0xff] }
  0xf7   : > { %v2314_v59 = vunpack.i.h.bf16 %v2312_v58  ;;  %v2313_v3 = vunpack.i.l.bf16 %v2312_v58  ;;  %1911 = vmatprep.subr.bf16.mxu0 %v1910_v15  ;;  %1499 = vmatmul.mubr.f32.vlgmr.msra.gmra.mrb[16].mxu1 %v3003_v14 }
  0xf8   : > { %1913 = vmatpush1.bf16.msra.mxu0 %v1912_v13  ;;  %1503 = vmatprep.mubr.f32.mxu1 %v3010_v5  ;;  %v772_v40 = vsel %vm764_vm7, %v2308_v28, %v2233_v52  ;;  %v775_v48 = vsel %vm764_vm7, %v2309_v38, %v2238_v7 }
  0xf9   : > { %v2317_v57 = vpop.permute.xlu0 %2316  ;;  %v1914_v31 = vpack.c.bf16 %v775_v48, %v772_v40  ;;  %v771_v36 = vsel %vm764_vm7, %v2313_v3, %v2308_v28  ;;  %v774_v8 = vsel %vm764_vm7, %v2314_v59, %v2309_v38  ;;  %v3206_v28 = vunpack.i.h.bf16 %v2609_v54  ;;  %v1022_v54 = vld [vmem:[%s3200_s1 + $0x98] sm:$0xff] }
  0xfa   : > { %v2319_v52 = vunpack.i.h.bf16 %v2317_v57  ;;  %v2318_v9 = vunpack.i.l.bf16 %v2317_v57  ;;  %v2322_v42 = vpop.permute.xlu1 %2321  ;;  %v1916_v7 = vpack.c.bf16 %v774_v8, %v771_v36  ;;  %v3207_v59 = vunpack.i.h.bf16 %v2638_v17  ;;  %v1019_v57 = vld [vmem:[%s3200_s1 + $0x80] sm:$0xff]  ;;  %v1021_v17 = vld [vmem:[%s3200_s1 + $0x90] sm:$0xff] }
  0xfb   : > { %v2324_v37 = vunpack.i.h.bf16 %v2322_v42  ;;  %v2323_v27 = vunpack.i.l.bf16 %v2322_v42  ;;  %1915 = vmatprep.subr.bf16.mxu0 %v1914_v31  ;;  %1504 = vmatmul.mubr.f32.gmra.mrb[18].mxu1 %v3023_v0  ;;  %v3208_v40 = vunpack.i.h.bf16 %v2644_v25  ;;  %v1025_v25 = vld [vmem:[%s3200_s1 + $0xb0] sm:$0xff] }
  0xfc   : > { %1917 = vmatpush1.bf16.msra.mxu0 %v1916_v7  ;;  %1508 = vmatprep.mubr.f32.mxu1 %v3030_v39  ;;  %v867_v35 = vsel %vm865_vm8, %v2318_v9, %v2258_v49  ;;  %v870_v22 = vsel %vm865_vm8, %v2319_v52, %v2263_v20 }
  0xfd   : > { %v2327_v21 = vpop.permute.xlu0 %2326  ;;  %v1918_v4 = vpack.c.bf16 %v870_v22, %v867_v35  ;;  %v866_v46 = vsel %vm865_vm8, %v2323_v27, %v2318_v9  ;;  %v869_v2 = vsel %vm865_vm8, %v2324_v37, %v2319_v52 }
  0xfe   : > { %v2329_v6 = vunpack.i.h.bf16 %v2327_v21  ;;  %v2328_v49 = vunpack.i.l.bf16 %v2327_v21  ;;  %v2332_v16 = vpop.permute.xlu1 %2331  ;;  %v1920_v62 = vpack.c.bf16 %v869_v2, %v866_v46 }
  0xff   : > { %v2334_v61 = vunpack.i.h.bf16 %v2332_v16  ;;  %v2333_v20 = vunpack.i.l.bf16 %v2332_v16  ;;  %1919 = vmatprep.subr.bf16.mxu0 %v1918_v4  ;;  %1509 = vmatmul.mubr.f32.gmra.mrb[20].mxu1 %v1009_v26 }
 0x100   : > { %1921 = vmatpush1.bf16.msra.mxu0 %v1920_v62  ;;  %1513 = vmatprep.mubr.f32.mxu1 %v1013_v41  ;;  %v873_v1 = vsel %vm865_vm8, %v2328_v49, %v2283_v44  ;;  %v876_v11 = vsel %vm865_vm8, %v2329_v6, %v2288_v10 }
 0x101   : > { %v2337_v43 = vpop.permute.xlu0 %2336  ;;  %v1922_v45 = vpack.c.bf16 %v876_v11, %v873_v1  ;;  %v872_v63 = vsel %vm865_vm8, %v2333_v20, %v2328_v49  ;;  %v875_v29 = vsel %vm865_vm8, %v2334_v61, %v2329_v6 }
 0x102   : > { %v2339_v34 = vunpack.i.h.bf16 %v2337_v43  ;;  %v2338_v44 = vunpack.i.l.bf16 %v2337_v43  ;;  %v2342_v15 = vpop.permute.xlu1 %2341  ;;  %v1924_v51 = vpack.c.bf16 %v875_v29, %v872_v63 }
 0x103   : > { %v2344_v30 = vunpack.i.h.bf16 %v2342_v15  ;;  %v2343_v10 = vunpack.i.l.bf16 %v2342_v15  ;;  %1923 = vmatprep.subr.bf16.mxu0 %v1922_v45  ;;  %1514 = vmatmul.mubr.f32.gmra.mrb[22].mxu1 %v1012_v18 }
 0x104   : > { %1925 = vmatpush1.bf16.msra.mxu0 %v1924_v51  ;;  %1518 = vmatprep.mubr.f32.mxu1 %v1016_v24  ;;  %v969_v38 = vsel %vm966_vm1, %v2044_v50, %v2338_v44  ;;  %v972_v58 = vsel %vm966_vm1, %v3206_v28, %v2339_v34  ;;  %v1018_v50 = vld [vmem:[%s3200_s1 + $0x78] sm:$0xff] }
 0x105   : > { %v1966_v13 = vpack.c.bf16 %v972_v58, %v969_v38  ;;  %v975_v3 = vsel %vm966_vm1, %v3207_v59, %v2343_v10  ;;  %v978_v48 = vsel %vm966_vm1, %v3208_v40, %v2344_v30 }
 0x106   : > { %v1970_v47 = vpack.c.bf16 %v978_v48, %v975_v3 }
 0x107   : > { %1273 = vmatmul.mubr.f32.vlgmr.msra.gmra.mrb[0].mxu0 %v3003_v14  ;;  %1519 = vmatmul.mubr.f32.gmra.mrb[24].mxu1 %v1015_v32  ;;  %v1024_v14 = vld [vmem:[%s3200_s1 + $0xa8] sm:$0xff] }
 0x108   : > { %1967 = vmatprep.subr.bf16.mxu1 %v1966_v13  ;;  %1278 = vmatprep.mubr.f32.mxu0 %v3010_v5 }
 0x109   : > { %1969 = vmatpush3.bf16.msra.mxu1 %v1966_v13  ;;  %1523 = vmatprep.mubr.f32.mxu1 %v1019_v57 }
 0x10a   : > { %1971 = vmatprep.subr.bf16.mxu1 %v1970_v47 }
 0x10b   : > { %1279 = vmatmul.mubr.f32.gmra.mrb[2].mxu0 %v3023_v0  ;;  %1524 = vmatmul.mubr.f32.gmra.mrb[26].mxu1 %v1018_v50 }
 0x10c   : > { %1284 = vmatprep.mubr.f32.mxu0 %v3030_v39  ;;  %1528 = vmatprep.mubr.f32.mxu1 %v1022_v54 }
 0x10d   : > { %1973 = vmatpush3.bf16.msra.mxu1 %v1970_v47 }
 0x10f   : > { %1285 = vmatmul.mubr.f32.gmra.mrb[4].mxu0 %v1009_v26  ;;  %1529 = vmatmul.mubr.f32.gmra.mrb[28].mxu1 %v1021_v17 }
 0x110   : > { %1290 = vmatprep.mubr.f32.mxu0 %v1013_v41  ;;  %1533 = vmatprep.mubr.f32.mxu1 %v1025_v25 }
 0x113   : > { %1291 = vmatmul.mubr.f32.gmra.mrb[6].mxu0 %v1012_v18  ;;  %1534 = vmatmul.mubr.f32.gmra.mrb[30].mxu1 %v1024_v14 }
 0x114   : > { %1296 = vmatprep.mubr.f32.mxu0 %v1016_v24  ;;  %1850 = vmatprep.mubr.msk.f32.mxu1 %vm1183_vm3, %v2670_v56 }
 0x117   : > { %1297 = vmatmul.mubr.f32.gmra.mrb[8].mxu0 %v1015_v32  ;;  %1851 = vmatmul.mubr.msk.f32.vlgmr.msra.gmra.mrb[32].mxu1 %vm1183_vm3, %v2693_v12 }
 0x118   : > { %1302 = vmatprep.mubr.f32.mxu0 %v1019_v57  ;;  %1853 = vmatprep.mubr.msk.f32.mxu1 %vm1183_vm3, %v2721_v33 }
 0x119   : > { %v1146_v6 = vpop.permute.xlu0 %1145  ;;  %v1151_v49 = vpop.permute.xlu1 %1150 }
 0x11b   : > { %1303 = vmatmul.mubr.f32.gmra.mrb[10].mxu0 %v1018_v50  ;;  %1854 = vmatmul.mubr.msk.f32.gmra.mrb[34].mxu1 %vm1183_vm3, %v2748_v60 }
 0x11c   : > { %1308 = vmatprep.mubr.f32.mxu0 %v1022_v54  ;;  %1856 = vmatprep.mubr.msk.f32.mxu1 %vm1183_vm3, %v2775_v23 }
 0x11d   : > { %v1156_v10 = vpop.permute.xlu1 %1155  ;;  %v1161_v57 = vpop.permute.xlu0 %1160 }
 0x11f   : > { %1309 = vmatmul.mubr.f32.gmra.mrb[12].mxu0 %v1021_v17  ;;  %1857 = vmatmul.mubr.msk.f32.gmra.mrb[36].mxu1 %vm1183_vm3, %v2797_v53 }
 0x120   : > { %1314 = vmatprep.mubr.f32.mxu0 %v1025_v25  ;;  %1859 = vmatprep.mubr.msk.f32.mxu1 %vm1183_vm3, %v2817_v19 }
 0x123   : > { %1315 = vmatmul.mubr.f32.gmra.mrb[14].mxu0 %v1024_v14  ;;  %1860 = vmatmul.mubr.msk.f32.gmra.mrb[38].mxu1 %vm1183_vm3, %v2835_v55 }
 0x176   : > { %v1387_v56 = vpop.f32.mrb[0].mxu1 }
 0x177   : > { %v1389_v12 = vpop.f32.mrb[1].mxu1 }
 0x17a   : > { %v1393_v33 = vpop.f32.mrb[2].mxu1 }
 0x17b   : > { %v1395_v60 = vpop.f32.mrb[3].mxu1 }
 0x17e   : > { %v1399_v5 = vpop.f32.mrb[4].mxu1 }
 0x17f   : > { %v1401_v0 = vpop.f32.mrb[5].mxu1 }
 0x182   : > { %v3115_v31 = vpop.f32.mrb[6].mxu1 }
 0x183   : > { %v3117_v23 = vpop.f32.mrb[7].mxu1 }
 0x186   : > { %v3119_v36 = vpop.f32.mrb[8].mxu1 }
 0x187   : > { %v3121_v53 = vpop.f32.mrb[9].mxu1 }
 0x18a   : > { %v3123_v8 = vpop.f32.mrb[10].mxu1 }
 0x18b   : > { %v3125_v19 = vpop.f32.mrb[11].mxu1 }
 0x18e   : > { %v3127_v39 = vpop.f32.mrb[12].mxu1 }
 0x18f   : > { %v3129_v55 = vpop.f32.mrb[13].mxu1 }
 0x192   : > { %v3131_v52 = vpop.f32.mrb[14].mxu1 }
 0x193   : > { %v3133_v9 = vpop.f32.mrb[15].mxu1 }
 0x1ca   : > { %v1806_v42 = vpop.f32.mrb[16].mxu1 }
 0x1cb   : > { %v1807_v7 = vpop.f32.mrb[17].mxu1 }
 0x1cc   : > { %v3135_v37 = vadd.f32 %v1807_v7, %v1806_v42 }
 0x1ce   : > { %v1809_v27 = vpop.f32.mrb[18].mxu1 }
 0x1cf   : > { %v1810_v35 = vpop.f32.mrb[19].mxu1 }
 0x1d0   : > { %v1811_v22 = vadd.f32 %v1810_v35, %v1809_v27 }
 0x1d2   : > { %v1812_v26 = vpop.f32.mrb[20].mxu1 }
 0x1d3   : > { %v1813_v21 = vpop.f32.mrb[21].mxu1 }
 0x1d4   : > { %v3137_v4 = vadd.f32 %v1813_v21, %v1812_v26  ;;  %v1501_v26 = vadd.f32 %v3135_v37, %v1146_v6 }
 0x1d6   : > { %v1815_v46 = vpop.f32.mrb[22].mxu1 }
 0x1d7   : > { %v1816_v2 = vpop.f32.mrb[23].mxu1 }
 0x1d8   : > { %v3139_v41 = vadd.f32 %v1816_v2, %v1815_v46 }
 0x1da   : > { %v1274_v16 = vpop.f32.mrb[0].mxu0  ;;  %v1818_v62 = vpop.f32.mrb[24].mxu1 }
 0x1db   : > { %v1275_v61 = vadd.f32 %v1274_v16, %v1146_v6  ;;  %v1276_v20 = vpop.f32.mrb[1].mxu0  ;;  %v1819_v1 = vpop.f32.mrb[25].mxu1 }
 0x1dc   : > { %v1277_v11 = vadd.f32 %v1276_v20, %v1146_v6  ;;  %v3141_v18 = vadd.f32 %v1819_v1, %v1818_v62 }
 0x1dd   : > { %v1388_v43 = vadd.f32 %v1387_v56, %v1275_v61  ;;  %v1516_v61 = vadd.f32 %v3139_v41, %v1161_v57 }
 0x1de   : > { %v1390_v45 = vadd.f32 %v1389_v12, %v1277_v11  ;;  %v1280_v63 = vpop.f32.mrb[2].mxu0  ;;  %v1821_v29 = vpop.f32.mrb[26].mxu1  ;;  %v1511_v11 = vadd.f32 %v3137_v4, %v1156_v10 }
 0x1df   : > { %2347 = vtanh.f32 %v1388_v43  ;;  %v1281_v24 = vadd.f32 %v1280_v63, %v1151_v49  ;;  %v1282_v34 = vpop.f32.mrb[3].mxu0  ;;  %v1822_v44 = vpop.f32.mrb[27].mxu1 }
 0x1e0   : > { %2349 = vtanh.f32 %v1390_v45  ;;  %v1283_v15 = vadd.f32 %v1282_v34, %v1151_v49  ;;  %v3143_v51 = vadd.f32 %v1822_v44, %v1821_v29 }
 0x1e1   : > { %v1394_v30 = vadd.f32 %v1393_v33, %v1281_v24 }
 0x1e2   : > { %v1396_v32 = vadd.f32 %v1395_v60, %v1283_v15  ;;  %v1286_v38 = vpop.f32.mrb[4].mxu0  ;;  %v1824_v28 = vpop.f32.mrb[28].mxu1 }
 0x1e3   : > { %2351 = vtanh.f32 %v1394_v30  ;;  %v1287_v58 = vadd.f32 %v1286_v38, %v1156_v10  ;;  %v1288_v13 = vpop.f32.mrb[5].mxu0  ;;  %v1825_v59 = vpop.f32.mrb[29].mxu1 }
 0x1e4   : > { %2353 = vtanh.f32 %v1396_v32  ;;  %v1289_v3 = vadd.f32 %v1288_v13, %v1156_v10  ;;  %v3146_v40 = vadd.f32 %v1825_v59, %v1824_v28 }
 0x1e5   : > { %v1400_v48 = vadd.f32 %v1399_v5, %v1287_v58  ;;  %v1166_v5 = vpop.permute.xlu1 %1165 }
 0x1e6   : > { %v1402_v47 = vadd.f32 %v1401_v0, %v1289_v3  ;;  %v1292_v50 = vpop.f32.mrb[6].mxu0  ;;  %v1827_v54 = vpop.f32.mrb[30].mxu1  ;;  %v1506_v0 = vadd.f32 %v1811_v22, %v1151_v49  ;;  %v1521_v38 = vadd.f32 %v3141_v18, %v1166_v5 }
 0x1e7   : > { %2355 = vtanh.f32 %v1400_v48  ;;  %v1293_v17 = vadd.f32 %v1292_v50, %v1161_v57  ;;  %v1294_v25 = vpop.f32.mrb[7].mxu0  ;;  %v1828_v14 = vpop.f32.mrb[31].mxu1 }
 0x1e8   : > { %2357 = vtanh.f32 %v1402_v47  ;;  %v1295_v56 = vadd.f32 %v1294_v25, %v1161_v57  ;;  %v3153_v12 = vadd.f32 %v1828_v14, %v1827_v54 }
 0x1e9   : > { %v2348_v33 = vpop.eup %2347  ;;  %v1406_v60 = vadd.f32 %v3115_v31, %v1293_v17 }
 0x1ea   : > { %v2350_v42 = vpop.eup %2349  ;;  %1668 = vst [vmem:[%s3151_s18] sm:$0xff] %v2348_v33  ;;  %v1408_v7 = vadd.f32 %v3117_v23, %v1295_v56  ;;  %v1298_v27 = vpop.f32.mrb[8].mxu0 }
 0x1eb   : > { %v1852_v35 = vpop.f32.mrb[32].mxu1  ;;  %1669 = vst [vmem:[%s3151_s18 + $0x8] sm:$0xff] %v2350_v42  ;;  %2359 = vtanh.f32 %v1406_v60  ;;  %v1299_v21 = vadd.f32 %v1298_v27, %v1166_v5  ;;  %v1300_v2 = vpop.f32.mrb[9].mxu0 }
 0x1ec   : > { %v1611_v46 = vadd.f32 %v1852_v35, %v1506_v0  ;;  %v1605_v16 = vpop.f32.mrb[33].mxu1  ;;  %2361 = vtanh.f32 %v1408_v7  ;;  %v1301_v31 = vadd.f32 %v1300_v2, %v1166_v5  ;;  %v1171_v23 = vpop.permute.xlu0 %1170 }
 0x1ed   : > { %v1606_v62 = vadd.f32 %v1605_v16, %v1501_v26  ;;  %v2352_v22 = vpop.eup %2351  ;;  %v1412_v49 = vadd.f32 %v3119_v36, %v1299_v21  ;;  %v1526_v44 = vadd.f32 %v3143_v51, %v1171_v23 }
 0x1ee   : > { %2363 = vtanh.f32 %v1611_v46  ;;  %v2354_v20 = vpop.eup %2353  ;;  %1671 = vst [vmem:[%s3151_s18 + $0x18] sm:$0xff] %v2352_v22  ;;  %v1414_v37 = vadd.f32 %v3121_v53, %v1301_v31  ;;  %v1304_v6 = vpop.f32.mrb[10].mxu0 }
 0x1ef   : > { %2365 = vtanh.f32 %v1606_v62  ;;  %v1855_v1 = vpop.f32.mrb[34].mxu1  ;;  %1672 = vst [vmem:[%s3151_s18 + $0x20] sm:$0xff] %v2354_v20  ;;  %v1305_v43 = vadd.f32 %v1304_v6, %v1171_v23  ;;  %v1306_v63 = vpop.f32.mrb[11].mxu0 }
 0x1f0   : > { %2367 = vtanh.f32 %v1412_v49  ;;  %v1621_v45 = vadd.f32 %v1855_v1, %v1516_v61  ;;  %v1615_v36 = vpop.f32.mrb[35].mxu1  ;;  %v1307_v29 = vadd.f32 %v1306_v63, %v1171_v23  ;;  %v1176_v53 = vpop.permute.xlu1 %1175 }
 0x1f1   : > { %2369 = vtanh.f32 %v1414_v37  ;;  %v1616_v41 = vadd.f32 %v1615_v36, %v1511_v11  ;;  %v2356_v24 = vpop.eup %2355  ;;  %v1418_v34 = vadd.f32 %v3123_v8, %v1305_v43  ;;  %v1181_v15 = vpop.permute.xlu0 %1180  ;;  %v1531_v18 = vadd.f32 %v3146_v40, %v1176_v53 }
 0x1f2   : > { %2371 = vtanh.f32 %v1621_v45  ;;  %v2358_v4 = vpop.eup %2357  ;;  %1674 = vst [vmem:[%s3151_s18 + $0x30] sm:$0xff] %v2356_v24  ;;  %v1420_v30 = vadd.f32 %v3125_v19, %v1307_v29  ;;  %v1310_v10 = vpop.f32.mrb[12].mxu0  ;;  %v1536_v19 = vadd.f32 %v3153_v12, %v1181_v15 }
 0x1f3   : > { %2373 = vtanh.f32 %v1616_v41  ;;  %v1858_v32 = vpop.f32.mrb[36].mxu1  ;;  %1675 = vst [vmem:[%s3151_s18 + $0x38] sm:$0xff] %v2358_v4  ;;  %v1311_v28 = vadd.f32 %v1310_v10, %v1176_v53  ;;  %v1312_v8 = vpop.f32.mrb[13].mxu0 }
 0x1f4   : > { %2375 = vtanh.f32 %v1418_v34  ;;  %v1631_v58 = vadd.f32 %v1858_v32, %v1526_v44  ;;  %v1625_v13 = vpop.f32.mrb[37].mxu1  ;;  %v1313_v51 = vadd.f32 %v1312_v8, %v1176_v53 }
 0x1f5   : > { %2377 = vtanh.f32 %v1420_v30  ;;  %v1626_v59 = vadd.f32 %v1625_v13, %v1521_v38  ;;  %v2360_v3 = vpop.eup %2359  ;;  %v1424_v48 = vadd.f32 %v3127_v39, %v1311_v28 }
 0x1f6   : > { %2379 = vtanh.f32 %v1631_v58  ;;  %v2362_v57 = vpop.eup %2361  ;;  %1677 = vst [vmem:[%s3151_s18 + $0x48] sm:$0xff] %v2360_v3  ;;  %v1426_v47 = vadd.f32 %v3129_v55, %v1313_v51  ;;  %v1316_v50 = vpop.f32.mrb[14].mxu0 }
 0x1f7   : > { %2381 = vtanh.f32 %v1626_v59  ;;  %v1861_v54 = vpop.f32.mrb[38].mxu1  ;;  %1678 = vst [vmem:[%s3151_s18 + $0x50] sm:$0xff] %v2362_v57  ;;  %v1317_v25 = vadd.f32 %v1316_v50, %v1181_v15  ;;  %v1318_v14 = vpop.f32.mrb[15].mxu0 }
 0x1f8   : > { %v2364_v17 = vpop.eup %2363  ;;  %2383 = vtanh.f32 %v1424_v48  ;;  %v1641_v39 = vadd.f32 %v1861_v54, %v1536_v19  ;;  %v1635_v56 = vpop.f32.mrb[39].mxu1  ;;  %v1319_v40 = vadd.f32 %v1318_v14, %v1181_v15 }
 0x1f9   : > { %v2366_v12 = vpop.eup %2365  ;;  %1673 = vst [vmem:[%s3151_s18 + $0x28] sm:$0xff] %v2364_v17  ;;  %2385 = vtanh.f32 %v1426_v47  ;;  %v1636_v33 = vadd.f32 %v1635_v56, %v1531_v18  ;;  %v1430_v60 = vadd.f32 %v3131_v52, %v1317_v25 }
 0x1fa   : > { %v2368_v55 = vpop.eup %2367  ;;  %1670 = vst [vmem:[%s3151_s18 + $0x10] sm:$0xff] %v2366_v12  ;;  %2387 = vtanh.f32 %v1641_v39  ;;  %v1432_v0 = vadd.f32 %v3133_v9, %v1319_v40 }
 0x1fb   : > { %v2370_v5 = vpop.eup %2369  ;;  %1680 = vst [vmem:[%s3151_s18 + $0x60] sm:$0xff] %v2368_v55  ;;  %2389 = vtanh.f32 %v1636_v33 }
 0x1fc   : > { %v2372_v42 = vpop.eup %2371  ;;  %1681 = vst [vmem:[%s3151_s18 + $0x68] sm:$0xff] %v2370_v5  ;;  %2391 = vtanh.f32 %v1430_v60 }
 0x1fd   : > { %v2374_v7 = vpop.eup %2373  ;;  %1679 = vst [vmem:[%s3151_s18 + $0x58] sm:$0xff] %v2372_v42  ;;  %2393 = vtanh.f32 %v1432_v0 }
 0x1fe   : > { %v2376_v27 = vpop.eup %2375  ;;  %1676 = vst [vmem:[%s3151_s18 + $0x40] sm:$0xff] %v2374_v7 }
 0x1ff   : > { %v2378_v52 = vpop.eup %2377  ;;  %1683 = vst [vmem:[%s3151_s18 + $0x78] sm:$0xff] %v2376_v27 }
 0x200   : > { %v2380_v35 = vpop.eup %2379  ;;  %1684 = vst [vmem:[%s3151_s18 + $0x80] sm:$0xff] %v2378_v52 }
 0x201   : > { %v2382_v9 = vpop.eup %2381  ;;  %1685 = vst [vmem:[%s3151_s18 + $0x88] sm:$0xff] %v2380_v35 }
 0x202   : > { %v2384_v26 = vpop.eup %2383  ;;  %1682 = vst [vmem:[%s3151_s18 + $0x70] sm:$0xff] %v2382_v9 }
 0x203   : > { %v2386_v21 = vpop.eup %2385  ;;  %1686 = vst [vmem:[%s3151_s18 + $0x90] sm:$0xff] %v2384_v26 }
 0x204   : > { %v2388_v46 = vpop.eup %2387  ;;  %1687 = vst [vmem:[%s3151_s18 + $0x98] sm:$0xff] %v2386_v21 }
 0x205   : > { %v2390_v2 = vpop.eup %2389  ;;  %1691 = vst [vmem:[%s3151_s18 + $0xb8] sm:$0xff] %v2388_v46 }
 0x206   : > { %v2392_v16 = vpop.eup %2391  ;;  %1688 = vst [vmem:[%s3151_s18 + $0xa0] sm:$0xff] %v2390_v2 }
 0x207   : > { %v2394_v31 = vpop.eup %2393  ;;  %1689 = vst [vmem:[%s3151_s18 + $0xa8] sm:$0xff] %v2392_v16 }
 0x208   : > { %1690 = vst [vmem:[%s3151_s18 + $0xb0] sm:$0xff] %v2394_v31 }
 0x209 PF: > { %s13_s12 = sadd.s32 1, %s2401_s12  }
 0x20a   : > { %p10_p4 = scmp.ge.s32.totalorder %s13_s12, 4  }
 0x20c   :  { %12 = sbr.rel (!%p10_p4) target bundleno = 1 (0x1), region = 62 }

</bundles_post_ra>
